<compile_context>
chip_gen: v7x
topology: tpu7x:2x2x1
jax: 0.10.0
libtpu: 0.0.40
codegen_flags: <defaults>
</compile_context>

<pallas_src>
import math

import jax
import jax.numpy as jnp
from jax.experimental import pallas as pl
from jax.experimental.pallas import tpu as pltpu

_MiB = 1 << 20


def _vmem_capacity_bytes():
    try:
        info = pltpu.get_tpu_info()
        cap = getattr(info, "vmem_capacity_bytes", None)
        if cap:
            return int(cap)
    except Exception:
        pass
    try:
        kind = jax.devices()[0].device_kind.lower()
    except Exception:
        kind = ""
    # v7x has 64 MiB per TensorCore; v5e/v6e (and older) have 128 MiB.
    return 64 * _MiB if "v7" in kind else 128 * _MiB


def _vmem_limit_bytes(need, cap):
    return int(min(max(need + 8 * _MiB, 32 * _MiB), int(0.9 * cap)))


def _choose_channel_fold(hw, c, max_fold=32):
    """Fold k spatial rows into the channel axis so the lane (last) dim is a
    multiple of 128 (dense, unmasked vld/vst).  Metadata-only on NHWC."""
    if c % 128 == 0:
        return 1
    k = 128 // math.gcd(c, 128)  # minimal k with (k*c) % 128 == 0
    if k <= max_fold and hw % k == 0:
        return k
    return 1


def _make_resident_kernel(eps, k, c):
    """Single-pass kernel: one HBM read + one HBM write per element.
    x block is (bn, hw_f, k*c) with k spatial rows folded into channels."""

    def kernel(x_ref, gamma_ref, beta_ref, o_ref):
        x = x_ref[...]                                    # (bn, hw_f, cf)
        xf = x.astype(jnp.float32)
        ssf = jnp.sum(xf * xf, axis=1, keepdims=True)     # (bn, 1, cf) f32
        if k == 1:
            ss = ssf
        else:
            # fold the k lane-partials back to per-original-channel sums
            ss = ssf[:, :, 0:c]
            for j in range(1, k):
                ss = ss + ssf[:, :, j * c:(j + 1) * c]    # (bn, 1, c)
        gx = jnp.sqrt(ss)                                 # (bn, 1, c)
        mean = jnp.mean(gx, axis=-1, keepdims=True)       # (bn, 1, 1)
        d = mean + eps
        # approx reciprocal (EUP slot) + one Newton step: ~f32 accurate,
        # not bit-identical to a divide.
        r = pl.reciprocal(d, approx=True)
        r = r * (2.0 - d * r)
        nx = gx * r                                       # (bn, 1, c)
        s = gamma_ref[...] * nx + 1.0                     # (bn, 1, c) f32
        if k > 1:
            s = jnp.concatenate([s] * k, axis=-1)         # re-fold to (bn, 1, cf)
        o_ref[...] = (xf * s + beta_ref[...]).astype(o_ref.dtype)

    return kernel


def _make_stats_kernel(hw_f, ts, tps, nsplit):
    """Pass 1: per-(sample*split, folded-channel) sum-of-squares accumulated
    over spatial tiles.  Reduction axis is last in the grid ('arbitrary')."""
    s_tiles = nsplit * tps
    has_partial = (hw_f % ts) != 0

    def kernel(x_ref, ss_ref):
        j = pl.program_id(1)

        @pl.when(j == 0)
        def _():
            ss_ref[...] = jnp.zeros_like(ss_ref)

        xf = x_ref[...].astype(jnp.float32)               # (1, ts, cf)
        if not has_partial:
            ss_ref[...] += jnp.sum(xf * xf, axis=1, keepdims=True)
        else:
            if nsplit > 1:
                g_tile = (pl.program_id(0) % nsplit) * tps + j
            else:
                g_tile = j
            is_last = g_tile == s_tiles - 1

            # only the last (partial) spatial tile pays the iota+compare+where
            @pl.when(jnp.logical_not(is_last))
            def _():
                ss_ref[...] += jnp.sum(xf * xf, axis=1, keepdims=True)

            @pl.when(is_last)
            def _():
                row = jax.lax.broadcasted_iota(jnp.int32, xf.shape, 1) + g_tile * ts
                xm = jnp.where(row < hw_f, xf, 0.0)
                ss_ref[...] += jnp.sum(xm * xm, axis=1, keepdims=True)

    return kernel


def _apply_kernel(s_ref, beta_ref, x_ref, o_ref):
    """Pass 2: pure streaming out = x * s + beta (s precomputed per (n, c))."""
    xf = x_ref[...].astype(jnp.float32)                   # (1, ts, cf)
    o_ref[...] = (xf * s_ref[...] + beta_ref[...]).astype(o_ref.dtype)


def grn(x, gamma, beta, *, eps=1e-6, spatial_tile=None):
    """GRN forward.  x: (N, H, W, C) channels-last; gamma/beta: any shape with
    C elements (the PyTorch module stores them as (1, C)).
    `spatial_tile` (optional) is in *folded* spatial rows and forces the
    tiled two-pass path (mainly for testing)."""
    n, h, w, c = x.shape
    hw = h * w
    dtype = x.dtype
    itemsize = dtype.itemsize

    gamma_f = jnp.asarray(gamma).reshape(1, c).astype(jnp.float32)
    beta_f = jnp.asarray(beta).reshape(1, c).astype(jnp.float32)

    # lane-densify: fold k spatial rows into the channel axis
    k = _choose_channel_fold(hw, c)
    cf = k * c
    hw_f = hw // k
    x3 = x.reshape(n, hw_f, cf)          # metadata-only for contiguous NHWC

    if k > 1:
        beta_fold = jnp.tile(beta_f, (1, k)).reshape(1, 1, cf)
    else:
        beta_fold = beta_f.reshape(1, 1, c)
    gamma3 = gamma_f.reshape(1, 1, c)

    vmem_cap = _vmem_capacity_bytes()
    budget = int(0.85 * vmem_cap)
    block_target = 3 * _MiB if vmem_cap <= 64 * _MiB else 6 * _MiB

    sample_bytes = hw * c * itemsize
    sample_f32 = hw * c * 4

    def resident_need(bn):
        # in + out blocks (double-buffered) + in-kernel f32 temporaries
        return 4 * bn * sample_bytes + 2 * bn * sample_f32 + 2 * _MiB

    if spatial_tile is None and resident_need(1) <= budget:
        # ------------------ fully-resident single-pass path ------------------
        bn = 1
        min_steps = min(4, n)  # keep enough grid steps so writeback overlaps reads
        for d in range(1, n + 1):
            if n % d:
                continue
            if d * sample_bytes > block_target or resident_need(d) > budget:
                continue
            if n // d < min_steps:
                continue
            bn = d
        vmem_limit = _vmem_limit_bytes(resident_need(bn), vmem_cap)
        out3 = pl.pallas_call(
            _make_resident_kernel(eps, k, c),
            out_shape=jax.ShapeDtypeStruct((n, hw_f, cf), dtype),
            grid_spec=pltpu.PrefetchScalarGridSpec(
                num_scalar_prefetch=0,
                grid=(n // bn,),
                in_specs=[
                    pl.BlockSpec((bn, hw_f, cf), lambda i: (i, 0, 0)),
                    pl.BlockSpec((1, 1, c), lambda i: (0, 0, 0)),
                    pl.BlockSpec((1, 1, cf), lambda i: (0, 0, 0)),
                ],
                out_specs=pl.BlockSpec((bn, hw_f, cf), lambda i: (i, 0, 0)),
            ),
            compiler_params=pltpu.CompilerParams(
                dimension_semantics=("parallel",),
                vmem_limit_bytes=vmem_limit,
            ),
        )(x3, gamma3, beta_fold)
        return out3.reshape(n, h, w, c)

    # ------------------ tiled two-pass path ------------------
    sub = max(8, 32 // itemsize)          # sublane packing: 8 f32, 16 bf16, 32 i8
    if spatial_tile is None:
        target_rows = max(sub, block_target // max(1, cf * itemsize))
        ts = hw_f if hw_f <= target_rows else (target_rows // sub) * sub
    else:
        ts = min(int(spatial_tile), hw_f)
        if ts < hw_f:
            ts = max(sub, (ts // sub) * sub)
    s_tiles = pl.cdiv(hw_f, ts)

    # Small batch: split the spatial reduction into 2 halves and fold the split
    # into the parallel grid axis so both v7x TensorCores get stats work.
    nsplit = 2 if (n < 4 and s_tiles >= 4 and s_tiles % 2 == 0) else 1
    tps = s_tiles // nsplit

    tile_bytes = ts * cf * itemsize
    need = 6 * tile_bytes + 2 * ts * cf * 4 + 2 * _MiB
    vmem_limit = _vmem_limit_bytes(need, vmem_cap)

    if nsplit > 1:
        x_stats_spec = pl.BlockSpec(
            (1, ts, cf), lambda q, j: (q // nsplit, (q % nsplit) * tps + j, 0))
    else:
        x_stats_spec = pl.BlockSpec((1, ts, cf), lambda q, j: (q, j, 0))

    # Pass 1: per-(sample*split) folded-channel sum-of-squares.
    ss = pl.pallas_call(
        _make_stats_kernel(hw_f, ts, tps, nsplit),
        out_shape=jax.ShapeDtypeStruct((n * nsplit, 1, cf), jnp.float32),
        grid_spec=pltpu.PrefetchScalarGridSpec(
            num_scalar_prefetch=0,
            grid=(n * nsplit, tps),
            in_specs=[x_stats_spec],
            out_specs=pl.BlockSpec((1, 1, cf), lambda q, j: (q, 0, 0)),
        ),
        compiler_params=pltpu.CompilerParams(
            dimension_semantics=("parallel", "arbitrary"),
            vmem_limit_bytes=vmem_limit,
        ),
    )(x3)

    # Hoisted normalization: tiny O(N*C) math between the two pallas_calls.
    ss_c = ss.reshape(n, nsplit * k, c).sum(axis=1)        # (n, c) f32
    gx = jnp.sqrt(ss_c)
    nx = gx / (jnp.mean(gx, axis=-1, keepdims=True) + eps)
    s = gamma_f * nx + 1.0                                 # (n, c)
    if k > 1:
        s = jnp.tile(s, (1, k))                            # re-fold to (n, cf)
    s3 = s.reshape(n, 1, cf)

    # Pass 2: streaming apply out = x * s + beta.
    out3 = pl.pallas_call(
        _apply_kernel,
        out_shape=jax.ShapeDtypeStruct((n, hw_f, cf), dtype),
        grid_spec=pltpu.PrefetchScalarGridSpec(
            num_scalar_prefetch=0,
            grid=(n, s_tiles),
            in_specs=[
                pl.BlockSpec((1, 1, cf), lambda i, j: (i, 0, 0)),
                pl.BlockSpec((1, 1, cf), lambda i, j: (0, 0, 0)),
                pl.BlockSpec((1, ts, cf), lambda i, j: (i, j, 0)),
            ],
            out_specs=pl.BlockSpec((1, ts, cf), lambda i, j: (i, j, 0)),
        ),
        compiler_params=pltpu.CompilerParams(
            dimension_semantics=("parallel", "parallel"),
            vmem_limit_bytes=vmem_limit,
        ),
    )(s3, beta_fold, x3)
    return out3.reshape(n, h, w, c)


def grn_reference(x, gamma, beta, eps=1e-6):
    xf = x.astype(jnp.float32)
    gx = jnp.sqrt(jnp.sum(xf * xf, axis=(1, 2), keepdims=True))
    nx = gx / (jnp.mean(gx, axis=-1, keepdims=True) + eps)
    c = x.shape[-1]
    g = jnp.asarray(gamma).reshape(1, 1, 1, c).astype(jnp.float32)
    b = jnp.asarray(beta).reshape(1, 1, 1, c).astype(jnp.float32)
    return (g * (xf * nx) + b + xf).astype(x.dtype)


if __name__ == "__main__":
    key = jax.random.PRNGKey(0)
    k1, k2, k3, k4, kg, kb = jax.random.split(key, 6)
    ok = True

    def check(out, ref, atol, rtol):
        return bool(jnp.allclose(jnp.asarray(out, jnp.float32),
                                 jnp.asarray(ref, jnp.float32),
                                 atol=atol, rtol=rtol))

    # Case 1: f32, C=16 -> lane-fold k=8 (cf=128), fully-resident path, grid of 4.
    # (The module inits gamma/beta to zeros; use non-trivial values here.)
    N, H, W, C = 4, 8, 8, 16
    x = jax.random.normal(k1, (N, H, W, C), dtype=jnp.float32)
    g = jax.random.normal(kg, (1, C), dtype=jnp.float32) * 0.1
    b = jax.random.normal(kb, (1, C), dtype=jnp.float32) * 0.1
    out = grn(x, g, b)
    jax.block_until_ready(out)
    ok &= check(out, grn_reference(x, g, b), 1e-4, 1e-4)

    # Case 2: bf16, C=256 (already lane-dense, no fold), resident path, f32 epilogue.
    N2, H2, W2, C2 = 2, 8, 8, 256
    kg2, kb2 = jax.random.split(kg)
    xb = jax.random.normal(k2, (N2, H2, W2, C2), dtype=jnp.float32).astype(jnp.bfloat16)
    g2 = jax.random.normal(kg2, (1, C2), dtype=jnp.float32) * 0.1
    b2 = jax.random.normal(kb2, (1, C2), dtype=jnp.float32) * 0.1
    outb = grn(xb, g2, b2)
    jax.block_until_ready(outb)
    ok &= check(outb, grn_reference(xb, g2, b2), 3e-2, 3e-2)

    # Case 3: forced tiled two-pass path; N=1 exercises the 2-way spatial split
    # of the stats grid (both v7x TensorCores get work).
    N3, H3, W3, C3 = 1, 16, 16, 16
    x3 = jax.random.normal(k3, (N3, H3, W3, C3), dtype=jnp.float32)
    g3 = jax.random.normal(kg, (1, C3), dtype=jnp.float32) * 0.1
    b3 = jax.random.normal(kb, (1, C3), dtype=jnp.float32) * 0.1
    out3 = grn(x3, g3, b3, spatial_tile=8)
    jax.block_until_ready(out3)
    ok &= check(out3, grn_reference(x3, g3, b3), 1e-4, 1e-4)

    # Case 4: forced tiled path with a partial (masked) last spatial tile.
    N4, H4, W4, C4 = 2, 8, 9, 16
    x4 = jax.random.normal(k4, (N4, H4, W4, C4), dtype=jnp.float32)
    out4 = grn(x4, g3, b3, spatial_tile=8)
    jax.block_until_ready(out4)
    ok &= check(out4, grn_reference(x4, g3, b3), 1e-4, 1e-4)

    # Case 5: C=24, HW=36 -> no legal fold (hw % 16 != 0), unfolded resident path.
    N5, H5, W5, C5 = 2, 6, 6, 24
    x5 = jax.random.normal(k1, (N5, H5, W5, C5), dtype=jnp.float32)
    g5 = jax.random.normal(kg, (1, C5), dtype=jnp.float32) * 0.1
    b5 = jax.random.normal(kb, (1, C5), dtype=jnp.float32) * 0.1
    out5 = grn(x5, g5, b5)
    jax.block_until_ready(out5)
    ok &= check(out5, grn_reference(x5, g5, b5), 1e-4, 1e-4)

    assert ok, "GRN Pallas kernel mismatch vs reference"
    print("KERNEL_OK")
</pallas_src>

<mosaic_0001>
module attributes {stable_mosaic.version = 11 : i64} {
  func.func @kernel(%arg0: i32, %arg1: memref<1x8x128xf32, #tpu.memory_space<vmem>>, %arg2: memref<1x1x16xf32, #tpu.memory_space<vmem>>, %arg3: memref<1x1x128xf32, #tpu.memory_space<vmem>>, %arg4: memref<1x8x128xf32, #tpu.memory_space<vmem>>) attributes {dimension_semantics = [#tpu.dimension_semantics<parallel>], iteration_bounds = array<i64: 4>, scalar_prefetch = 0 : i64, scratch_operands = 0 : i64, tpu.core_type = #tpu.core_type<tc>, window_params = [{transform_indices = @transform_0, window_bounds = array<i64: 1, 8, 128>}, {pipeline_mode = #tpu.pipeline_mode<synchronous>, transform_indices = @transform_1, window_bounds = array<i64: 1, 1, 16>}, {pipeline_mode = #tpu.pipeline_mode<synchronous>, transform_indices = @transform_2, window_bounds = array<i64: 1, 1, 128>}, {transform_indices = @transform_3, window_bounds = array<i64: 1, 8, 128>}]} {
    %c0 = arith.constant 0 : index
    %c0_0 = arith.constant 0 : index
    %c0_1 = arith.constant 0 : index
    %0 = vector.load %arg1[%c0, %c0_0, %c0_1] : memref<1x8x128xf32, #tpu.memory_space<vmem>>, vector<1x8x128xf32>
    %1 = arith.mulf %0, %0 : vector<1x8x128xf32>
    %cst = arith.constant dense<0.000000e+00> : vector<1x128xf32>
    %2 = vector.multi_reduction <add>, %1, %cst [1] : vector<1x8x128xf32> to vector<1x128xf32>
    %3 = vector.shape_cast %2 : vector<1x128xf32> to vector<1x1x128xf32>
    %4 = vector.extract_strided_slice %3 {offsets = [0, 0, 0], sizes = [1, 1, 16], strides = [1, 1, 1]} : vector<1x1x128xf32> to vector<1x1x16xf32>
    %5 = vector.extract_strided_slice %3 {offsets = [0, 0, 16], sizes = [1, 1, 16], strides = [1, 1, 1]} : vector<1x1x128xf32> to vector<1x1x16xf32>
    %6 = arith.addf %4, %5 : vector<1x1x16xf32>
    %7 = vector.extract_strided_slice %3 {offsets = [0, 0, 32], sizes = [1, 1, 16], strides = [1, 1, 1]} : vector<1x1x128xf32> to vector<1x1x16xf32>
    %8 = arith.addf %6, %7 : vector<1x1x16xf32>
    %9 = vector.extract_strided_slice %3 {offsets = [0, 0, 48], sizes = [1, 1, 16], strides = [1, 1, 1]} : vector<1x1x128xf32> to vector<1x1x16xf32>
    %10 = arith.addf %8, %9 : vector<1x1x16xf32>
    %11 = vector.extract_strided_slice %3 {offsets = [0, 0, 64], sizes = [1, 1, 16], strides = [1, 1, 1]} : vector<1x1x128xf32> to vector<1x1x16xf32>
    %12 = arith.addf %10, %11 : vector<1x1x16xf32>
    %13 = vector.extract_strided_slice %3 {offsets = [0, 0, 80], sizes = [1, 1, 16], strides = [1, 1, 1]} : vector<1x1x128xf32> to vector<1x1x16xf32>
    %14 = arith.addf %12, %13 : vector<1x1x16xf32>
    %15 = vector.extract_strided_slice %3 {offsets = [0, 0, 96], sizes = [1, 1, 16], strides = [1, 1, 1]} : vector<1x1x128xf32> to vector<1x1x16xf32>
    %16 = arith.addf %14, %15 : vector<1x1x16xf32>
    %17 = vector.extract_strided_slice %3 {offsets = [0, 0, 112], sizes = [1, 1, 16], strides = [1, 1, 1]} : vector<1x1x128xf32> to vector<1x1x16xf32>
    %18 = arith.addf %16, %17 : vector<1x1x16xf32>
    %19 = math.sqrt %18 : vector<1x1x16xf32>
    %cst_2 = arith.constant dense<0.000000e+00> : vector<1x1xf32>
    %20 = vector.multi_reduction <add>, %19, %cst_2 [2] : vector<1x1x16xf32> to vector<1x1xf32>
    %21 = vector.shape_cast %20 : vector<1x1xf32> to vector<1x1x1xf32>
    %cst_3 = arith.constant 1.600000e+01 : f32
    %22 = vector.broadcast %cst_3 : f32 to vector<1x1x1xf32>
    %23 = arith.divf %21, %22 : vector<1x1x1xf32>
    %cst_4 = arith.constant 9.99999997E-7 : f32
    %24 = vector.broadcast %cst_4 : f32 to vector<1x1x1xf32>
    %25 = arith.addf %23, %24 : vector<1x1x1xf32>
    %26 = tpu.reciprocal %25 {approx = true} : vector<1x1x1xf32> -> vector<1x1x1xf32>
    %27 = arith.mulf %25, %26 : vector<1x1x1xf32>
    %cst_5 = arith.constant 2.000000e+00 : f32
    %28 = vector.broadcast %cst_5 : f32 to vector<1x1x1xf32>
    %29 = arith.subf %28, %27 : vector<1x1x1xf32>
    %30 = arith.mulf %26, %29 : vector<1x1x1xf32>
    %31 = vector.broadcast %30 : vector<1x1x1xf32> to vector<1x1x16xf32>
    %32 = arith.mulf %19, %31 : vector<1x1x16xf32>
    %c0_6 = arith.constant 0 : index
    %c0_7 = arith.constant 0 : index
    %c0_8 = arith.constant 0 : index
    %33 = vector.load %arg2[%c0_6, %c0_7, %c0_8] : memref<1x1x16xf32, #tpu.memory_space<vmem>>, vector<1x1x16xf32>
    %34 = arith.mulf %33, %32 : vector<1x1x16xf32>
    %cst_9 = arith.constant 1.000000e+00 : f32
    %35 = vector.broadcast %cst_9 : f32 to vector<1x1x16xf32>
    %36 = arith.addf %34, %35 : vector<1x1x16xf32>
    %37 = tpu.concatenate %36, %36, %36, %36, %36, %36, %36, %36 in 2 : vector<1x1x16xf32>, vector<1x1x16xf32>, vector<1x1x16xf32>, vector<1x1x16xf32>, vector<1x1x16xf32>, vector<1x1x16xf32>, vector<1x1x16xf32>, vector<1x1x16xf32> -> vector<1x1x128xf32>
    %38 = vector.broadcast %37 : vector<1x1x128xf32> to vector<1x8x128xf32>
    %39 = arith.mulf %0, %38 : vector<1x8x128xf32>
    %c0_10 = arith.constant 0 : index
    %c0_11 = arith.constant 0 : index
    %c0_12 = arith.constant 0 : index
    %40 = vector.load %arg3[%c0_10, %c0_11, %c0_12] : memref<1x1x128xf32, #tpu.memory_space<vmem>>, vector<1x1x128xf32>
    %41 = vector.broadcast %40 : vector<1x1x128xf32> to vector<1x8x128xf32>
    %42 = arith.addf %39, %41 : vector<1x8x128xf32>
    %c0_13 = arith.constant 0 : index
    %c0_14 = arith.constant 0 : index
    %c0_15 = arith.constant 0 : index
    %43 = vector.load %arg4[%c0_13, %c0_14, %c0_15] : memref<1x8x128xf32, #tpu.memory_space<vmem>>, vector<1x8x128xf32>
    tpu.vector_store %arg4[%c0_13, %c0_14, %c0_15], %42 {strides = array<i32>} : memref<1x8x128xf32, #tpu.memory_space<vmem>>, vector<1x8x128xf32>,
    return
  }
  func.func @transform_0(%arg0: i32) -> (i32, i32, i32) {
    %c0_i32 = arith.constant 0 : i32
    %c0_i32_0 = arith.constant 0 : i32
    %c0_i32_1 = arith.constant 0 : i32
    return %arg0, %c0_i32, %c0_i32_0 : i32, i32, i32
  }
  func.func @transform_1(%arg0: i32) -> (i32, i32, i32) {
    %c0_i32 = arith.constant 0 : i32
    %c0_i32_0 = arith.constant 0 : i32
    %c0_i32_1 = arith.constant 0 : i32
    %c0_i32_2 = arith.constant 0 : i32
    return %c0_i32, %c0_i32_0, %c0_i32_1 : i32, i32, i32
  }
  func.func @transform_2(%arg0: i32) -> (i32, i32, i32) {
    %c0_i32 = arith.constant 0 : i32
    %c0_i32_0 = arith.constant 0 : i32
    %c0_i32_1 = arith.constant 0 : i32
    %c0_i32_2 = arith.constant 0 : i32
    return %c0_i32, %c0_i32_0, %c0_i32_1 : i32, i32, i32
  }
  func.func @transform_3(%arg0: i32) -> (i32, i32, i32) {
    %c0_i32 = arith.constant 0 : i32
    %c0_i32_0 = arith.constant 0 : i32
    %c0_i32_1 = arith.constant 0 : i32
    return %arg0, %c0_i32, %c0_i32_0 : i32, i32, i32
  }
}

</mosaic_0001>

<bundles_post_ra>
// kernel: tpu_custom_call.1
= control target key start
LH: loop header
LB: loop body
LE: loop exit
PB: predicated region body
PF: predicated region fallthrough
CT: control target
= control target key end

     0   :  { %8 = vsyncpa [#allocation3], 0  ;;  %s768_s0 = inlined_call_operand.hbm [shape: f32[4,8,128], index: 0, kind: input, shape index: {}]   ;;  %s769_s1 = inlined_call_operand.vmem [shape: f32[1,1,16], index: 1, kind: input, shape index: {}]   ;;  %s770_s2 = inlined_call_operand.vmem [shape: f32[1,1,128], index: 2, kind: input, shape index: {}]   ;;  %s771_s3 = inlined_call_operand.hbm [shape: f32[4,8,128], index: 3, kind: output, shape index: {}]  }
   0x1   :  { %10 = vsyncpa [#allocation3 + $0x1], 0 }
   0x2   :  { %11 = vsyncpa [#allocation4], 0 }
   0x3   :  { %13 = vsyncpa [#allocation4 + $0x1], 0  ;;  %s580_s12 = smov 0   ;;  %s582_s13 = smov 0  }
   0x4   :  { %s584_s14 = smov 0   ;;  %s586_s15 = smov 0  }
   0x5 LB: > { %s601_s16 = sadd.s32 4294967295, %s549_s15   ;;  %s383_s17 = sadd.s32 4294967294, %s549_s15   ;;  %s549_s15 = sphi %s586_s15, %s785_s15   ;;  %s545_s14 = sphi %s584_s14, %s784_s14   ;;  %s541_s13 = sphi %s582_s13, %s783_s13   ;;  %s537_s12 = sphi %s580_s12, %s782_s12  }
   0x6   : > { %s605_s18 = sadd.s32 1, %s549_s15   ;;  %s26_s19 = sadd.s32 1, %s545_s14 }
   0x7   : > { %s23_s20 = ssub.s32 %s549_s15, %s605_s18  ;;  %p33_p0 = scmp.ne.s32.totalorder %s545_s14, %s541_s13 }
   0x8   : > { %p24_p1 = scmp.eq.s32.totalorder %s23_s20, 0  ;;  %p34_p2 = scmp.eq.s32.totalorder %s549_s15, 0 }
   0x9   : > { %p39_p3 = scmp.ne.s32.totalorder %s541_s13, %s537_s12  ;;  %p40_p4 = scmp.eq.s32.totalorder %s601_s16, 0 }
   0xa   : > { %s617_s21 = scalar_select %p24_p1, %s545_s14, %s26_s19  }
   0xb   : > { %p619_p5 = por %p34_p2, %p33_p0  ;;  %p623_p6 = por %p40_p4, %p39_p3 }
   0xc   : > { %p105_p7 = scmp.eq.s32.totalorder %s601_s16, 3  ;;  %p111_p8 = scmp.eq.s32.totalorder %s383_s17, 3 }
   0xd   : > { %p408_p9 = scmp.lt.s32.totalorder %s549_s15, 4  ;;  %s137_s26 = sand.u32 1, %s545_s14  }
   0xe   : > { %p629_p10 = por %p105_p7, %p33_p0  ;;  %p633_p11 = por %p111_p8, %p39_p3 }
   0xf   : > { %s387_s27 = sshll.u32 %s549_s15, 7  ;;  %s386_s28 = sshll.u32 %s137_s26, 3 }
  0x10   : > { %s775_s24 = scalar_select %p629_p10, 1, 0 }
  0x11   : > { %s776_s25 = scalar_select %p633_p11, 1, 0 }
  0x12   : > { %s642_s4 = scalar_lea.hbm %s768_s0, %s387_s27  ;;  %s141_s5 = scalar_lea.vmem [#allocation2], %s386_s28 }
  0x13   : > { %s148_s6 = sshll.u32 %s141_s5, 4  ;;  %p646_p12 = pnand %p408_p9, %p619_p5  ;;  %s650_s6 = int_to_ptr.vmem [resolvable:$true] %s148_s6 }
  0x14   : > { %s138_s8 = scalar_lea.sflag [#allocation3], %s137_s26  ;;  %s453_s9 = scalar_lea.hbm %s642_s4, 128 }
  0x15   : > { %p454_p1 = scmp.ne.s32.totalorder %s642_s4, %s453_s9  ;;  %p455_p2 = pneg %p646_p12 }
  0x16   : > { %s458_s17 = scalar_lea.hbm %s768_s0, 512  ;;  %p459_p5 = scmp.lt.u32.totalorder %s642_s4, %s768_s0 }
  0x17   : > { %p456_p3 = pnand %p455_p2, %p454_p1  ;;  %p460_p7 = scmp.lt.u32.totalorder %s458_s17, %s453_s9 }
  0x18   : > { %p462_p9 = scmp.lt.u32.totalorder %s453_s9, %s642_s4 }
  0x19   : > { %p457_p4 = pneg %p456_p3  ;;  %p461_p8 = por %p460_p7, %p459_p5 }
  0x1b   : > { %p463_p13 = por %p462_p9, %p461_p8 }
  0x1d   : > { %p464_p0 = pnand %p463_p13, %p457_p4 }
  0x1f   : > { %467 = shalt.err (!%p464_p0)
}
  0x20   : > { %s468_s22 = scalar_lea.vmem %s650_s6, 128  ;;  %s551_s26 = smov [#allocation2]  }
  0x21   : > { %p469_p1 = scmp.ne.s32.totalorder %s650_s6, %s468_s22  ;;  %s473_s27 = sshll.u32 %s551_s26, 4  ;;  %s474_s27 = int_to_ptr.vmem [resolvable:$false] %s473_s27 }
  0x22   : > { %s475_s28 = scalar_lea.vmem %s474_s27, 256  ;;  %p476_p10 = scmp.lt.s32.totalorder %s650_s6, %s474_s27 }
  0x23   : > { %p471_p3 = pnand %p469_p1, %p455_p2  ;;  %p477_p5 = scmp.lt.s32.totalorder %s475_s28, %s468_s22 }
  0x25   : > { %p472_p11 = pneg %p471_p3  ;;  %p478_p7 = por %p477_p5, %p476_p10 }
  0x27   : > { %p479_p8 = pnand %p478_p7, %p472_p11 }
  0x29   : > { %482 = shalt.err (!%p479_p8)
}
  0x2a   : > { %403 = dma.hbm_to_vmem [thread:$0]  (!%p646_p12), %s642_s4, 128, %s650_s6, %s138_s8  }
  0x2b   : > { %p778_p13 = scmp.lt.s32.totalorder %s549_s15, 5  ;;  %p779_p0 = scmp.ge.s32.totalorder %s549_s15, 1 }
  0x2d   : > { %p154_p2 = pnand %p779_p0, %p778_p13 }
  0x2e   : > { %s684_s29 = sand.u32 (!%p154_p2), 1, %s541_s13  }
  0x2f   : > { %157 = sbr.rel (%p154_p2) target bundleno = 548 (0x224), region = 32  ;;  %s389_s30 = sshll.u32 (!%p154_p2), %s684_s29, 3 }
  0x30   : > { %s160_s5 = scalar_lea.sflag (!%p154_p2), [#allocation3], %s684_s29  ;;  %s163_s7 = scalar_lea.vmem (!%p154_p2), [#allocation2], %s389_s30 }
  0x36   : > { %528 = dma.done.wait (%p623_p6), %s160_s5, 128  }
  0x37   : > { %530 = vsyncadd (%p623_p6), %s160_s5, 4294967168  ;;  %v694_v0 = vld [vmem:[%s163_s7] sm:$0xff]  ;;  %s552_s4 = smov 112   ;;  %s553_s6 = smov 80   ;;  %vm230_vm1 = vcmask 122880   ;;  %v246_v32 = vlaneseq  ;;  %vm271_vm3 = vcmask 130048  }
  0x38   : > { %v187_v1 = vmul.f32 %v694_v0, %v694_v0  ;;  %s554_s8 = smov 96   ;;  %s555_s23 = smov 64   ;;  %v242_v37 = vld [vmem:[%s769_s1] sm:$0x1]  ;;  %vm273_vm4 = vcmask 261120   ;;  %vm275_vm5 = vcmask 392192  }
  0x39   : > { %s556_s9 = smov 48   ;;  %s557_s10 = smov 32   ;;  %v247_v35 = vshrl.u32 %v246_v32, 7  ;;  %vm277_vm6 = vcmask 523264   ;;  %vm279_vm7 = vcmask 654336   ;;  %vm281_vm8 = vcmask 785408  }
  0x3a   : > { %v188_v2 = vrot.slane %v187_v1, 4  ;;  %s558_s11 = smov 16   ;;  %vm283_vm9 = vcmask 916480   ;;  %v391_v58 = vld [vmem:[%s770_s2] ss:$0 sm:$0xff]  ;;  %s393_s26 = sshll.u32 %s601_s16, 7 }
  0x3b   : > { %v248_v39 = vsub.s32 0, %v247_v35  ;;  %s185_s27 = scalar_lea.vmem [#allocation5], %s389_s30  ;;  %p780_p10 = scmp.ne.s32.totalorder %s775_s24, 0 }
  0x3c   : > { %v189_v3 = vadd.f32 %v188_v2, %v187_v1  ;;  %s313_s28 = sshll.u32 %s185_s27, 4  ;;  %s559_s16 = smov [#allocation5]   ;;  %s727_s28 = int_to_ptr.vmem [resolvable:$true] %s313_s28 }
  0x3d   : > { %s487_s30 = sshll.u32 %s559_s16, 4  ;;  %s488_s30 = int_to_ptr.vmem [resolvable:$false] %s487_s30 }
  0x3e   : > { %v190_v4 = vrot.slane %v189_v3, 2  ;;  %p490_p4 = scmp.lt.s32.totalorder %s727_s28, %s488_s30 }
  0x40   : > { %v191_v5 = vadd.f32 %v190_v4, %v189_v3 }
  0x42   : > { %v192_v6 = vrot.slane %v191_v5, 1 }
  0x44   : > { %v193_v7 = vadd.f32 %v192_v6, %v191_v5 }
  0x46   : > { %195 = vrot.lane.b32.xlu0 %v193_v7, %s552_s4  ;;  %203 = vrot.lane.b32.xlu1 %v193_v7, %s553_s6 }
  0x4a   : > { %199 = vrot.lane.b32.xlu0 %v193_v7, %s554_s8  ;;  %207 = vrot.lane.b32.xlu1 %v193_v7, %s555_s23 }
  0x4e   : > { %211 = vrot.lane.b32.xlu0 %v193_v7, %s556_s9  ;;  %215 = vrot.lane.b32.xlu1 %v193_v7, %s557_s10 }
  0x52   : > { %219 = vrot.lane.b32.xlu0 %v193_v7, %s558_s11 }
  0xb8   : > { %v196_v8 = vpop.permute.xlu0 %195  ;;  %v204_v9 = vpop.permute.xlu1 %203 }
  0xb9   : > { %v198_v10 = vadd.f32 %v196_v8, %v193_v7 }
  0xbc   : > { %v200_v11 = vpop.permute.xlu0 %199  ;;  %v208_v12 = vpop.permute.xlu1 %207 }
  0xbd   : > { %v202_v13 = vadd.f32 %v200_v11, %v198_v10 }
  0xbf   : > { %v206_v14 = vadd.f32 %v204_v9, %v202_v13 }
  0xc0   : > { %v212_v15 = vpop.permute.xlu0 %211  ;;  %v216_v17 = vpop.permute.xlu1 %215 }
  0xc1   : > { %v210_v16 = vadd.f32 %v208_v12, %v206_v14 }
  0xc3   : > { %v214_v18 = vadd.f32 %v212_v15, %v210_v16 }
  0xc4   : > { %v220_v19 = vpop.permute.xlu0 %219 }
  0xc5   : > { %v218_v20 = vadd.f32 %v216_v17, %v214_v18 }
  0xc7   : > { %v222_v21 = vadd.f32 %v220_v19, %v218_v20 }
  0xc9   : > { %449 = vrsqrt.f32 %v222_v21  ;;  %vm225_vm0 = vcmp.eq.f32.partialorder %v222_v21, inf  ;;  %v228_v24 = vand.u32 2147483648, %v222_v21  ;;  %vm227_vm2 = vcmp.eq.f32.partialorder %v222_v21, 0.0 }
  0xd3   : > { %v450_v22 = vpop.eup %449 }
  0xd4   : > { %v224_v23 = vmul.f32 %v450_v22, %v222_v21 }
  0xd6   : > { %v226_v25 = vsel %vm225_vm0, %v222_v21, %v224_v23 }
  0xd7   : > { %v229_v26 = vsel %vm227_vm2, %v228_v24, %v226_v25 }
  0xd8   : > { %v231_v27 = vsel %vm230_vm1, %v229_v26, 0.0 }
  0xd9   : > { %232 = vadd.xlane.f32.xlu1 %v231_v27 }
 0x166   : > { %v233_v28 = vpop.xlane.xlu1 %232 }
 0x167   : > { %v235_v29 = vmul.f32 0.0625, %v233_v28 }
 0x169   : > { %v236_v30 = vadd.f32 1e-06, %v235_v29 }
 0x16b   : > { %451 = vrcp.f32 %v236_v30 }
 0x175   : > { %v452_v31 = vpop.eup %451 }
 0x176   : > { %v238_v33 = vmul.f32 %v452_v31, %v236_v30 }
 0x178   : > { %v239_v34 = vsub.f32 2.0, %v238_v33 }
 0x17a   : > { %v240_v36 = vmul.f32 %v452_v31, %v239_v34 }
 0x17c   : > { %v241_v38 = vmul.f32 %v240_v36, %v229_v26 }
 0x17e   : > { %v243_v40 = vmul.f32 %v242_v37, %v241_v38 }
 0x180   : > { %v244_v41 = vadd.f32 1.0, %v243_v40 }
 0x182   : > { %v249_v42 = vrot.slane %v244_v41, %v248_v39 }
 0x184   : > { %250 = vrot.lane.b32.xlu0 %v249_v42, %s558_s11 }
 0x188   : > { %253 = vrot.lane.b32.xlu0 %v249_v42, %s557_s10 }
 0x18c   : > { %256 = vrot.lane.b32.xlu0 %v249_v42, %s556_s9 }
 0x190   : > { %259 = vrot.lane.b32.xlu0 %v249_v42, %s555_s23  ;;  %s489_s23 = scalar_lea.vmem %s488_s30, 256 }
 0x194   : > { %262 = vrot.lane.b32.xlu0 %v249_v42, %s553_s6  ;;  %s300_s6 = scalar_lea.sflag [#allocation4], %s684_s29 }
 0x198   : > { %265 = vrot.lane.b32.xlu0 %v249_v42, %s554_s8  ;;  %s483_s8 = scalar_lea.vmem %s727_s28, 128 }
 0x199   : > { %p484_p6 = scmp.ne.s32.totalorder %s727_s28, %s483_s8  ;;  %p491_p9 = scmp.lt.s32.totalorder %s489_s23, %s483_s8 }
 0x19b   : > { %p485_p11 = pnand %p484_p6, %p780_p10  ;;  %p492_p1 = por %p491_p9, %p490_p4 }
 0x19c   : > { %268 = vrot.lane.b32.xlu0 %v249_v42, %s552_s4  ;;  %s725_s4 = scalar_lea.hbm %s771_s3, %s393_s26 }
 0x19d   : > { %p486_p12 = pneg %p485_p11 }
 0x19f   : > { %p493_p3 = pnand %p492_p1, %p486_p12 }
 0x1f6   : > { %v251_v43 = vpop.permute.xlu0 %250 }
 0x1f7   : > { %v272_v48 = vsel %vm271_vm3, %v244_v41, %v251_v43 }
 0x1fa   : > { %v254_v44 = vpop.permute.xlu0 %253 }
 0x1fb   : > { %v274_v49 = vsel %vm273_vm4, %v272_v48, %v254_v44 }
 0x1fe   : > { %v257_v45 = vpop.permute.xlu0 %256 }
 0x1ff   : > { %v276_v51 = vsel %vm275_vm5, %v274_v49, %v257_v45 }
 0x202   : > { %v260_v46 = vpop.permute.xlu0 %259 }
 0x203   : > { %v278_v52 = vsel %vm277_vm6, %v276_v51, %v260_v46 }
 0x206   : > { %v263_v47 = vpop.permute.xlu0 %262 }
 0x207   : > { %v280_v53 = vsel %vm279_vm7, %v278_v52, %v263_v47 }
 0x20a   : > { %v266_v50 = vpop.permute.xlu0 %265 }
 0x20b   : > { %v282_v54 = vsel %vm281_vm8, %v280_v53, %v266_v50 }
 0x20e   : > { %v269_v55 = vpop.permute.xlu0 %268 }
 0x20f   : > { %v284_v56 = vsel %vm283_vm9, %v282_v54, %v269_v55 }
 0x210   : > { %v288_v57 = vrot.slane %v284_v56, %v248_v39 }
 0x212   : > { %v289_v59 = vmul.f32 %v288_v57, %v694_v0 }
 0x214   : > { %v297_v60 = vadd.f32 %v391_v58, %v289_v59 }
 0x216   : > { %298 = vst [vmem:[%s185_s27] sm:$0xff] %v297_v60 }
 0x217   : > { %496 = shalt.err (!%p493_p3)
}
 0x218   : > { %s497_s29 = scalar_lea.hbm %s725_s4, 128  ;;  %s501_s11 = scalar_lea.hbm %s771_s3, 512 }
 0x219   : > { %p498_p5 = scmp.ne.s32.totalorder %s725_s4, %s497_s29  ;;  %p502_p13 = scmp.lt.u32.totalorder %s725_s4, %s771_s3 }
 0x21a   : > { %p503_p0 = scmp.lt.u32.totalorder %s501_s11, %s497_s29  ;;  %p505_p6 = scmp.lt.u32.totalorder %s497_s29, %s725_s4 }
 0x21b   : > { %p499_p7 = pnand %p498_p5, %p780_p10 }
 0x21c   : > { %p504_p2 = por %p503_p0, %p502_p13 }
 0x21d   : > { %p500_p8 = pneg %p499_p7 }
 0x21e   : > { %p506_p11 = por %p505_p6, %p504_p2 }
 0x220   : > { %p507_p12 = pnand %p506_p11, %p500_p8 }
 0x222   : > { %510 = shalt.err (!%p507_p12)
}
 0x223   : > { %398 = dma.vmem_to_hbm [thread:$0]  (%p780_p10), %s727_s28, 128, %s725_s4, %s300_s6  }
 0x224 PF: > { %p409_p4 = scmp.ge.s32.totalorder %s549_s15, 2  ;;  %s325_s20 = sand.u32 1, %s537_s12  }
 0x225   : > { %p781_p9 = scmp.ne.s32.totalorder %s776_s25, 0  ;;  %s326_s22 = scalar_lea.sflag [#allocation4], %s325_s20 }
 0x227   : > { %p405_p1 = pnand %p409_p4, %p781_p9 }
 0x229   : > { %532 = dma.done.wait (!%p405_p1), %s326_s22, 128  }
 0x22a   : > { %534 = vsyncadd (!%p405_p1), %s326_s22, 4294967168  ;;  %p16_p3 = scmp.ge.s32.totalorder %s605_s18, 6   ;;  %s782_s12 = smov %s541_s13 }
 0x22b   : > { %s783_s13 = smov %s545_s14  ;;  %s784_s14 = smov %s617_s21 }
 0x22c   : > { %s785_s15 = smov %s605_s18  ;;  %18 = sbr.rel (!%p16_p3) target bundleno = 5 (0x5), region = 77 }
 0x233   :  { %331 = vsyncpa [#allocation3], 1 }
 0x234   :  { %333 = vsyncpa [#allocation3 + $0x1], 1 }
 0x235   :  { %334 = vsyncpa [#allocation4], 1 }
 0x236   :  { %336 = vsyncpa [#allocation4 + $0x1], 1 }

</bundles_post_ra>
